<compile_context>
chip_gen: v7x
topology: tpu7x:2x2x1
jax: 0.10.0
libtpu: 0.0.40
codegen_flags: <defaults>
</compile_context>

<pallas_src>
import jax
import jax.numpy as jnp
from jax.experimental import pallas as pl
from jax.experimental.pallas import tpu as pltpu

HIDDEN = 64      # fixed by the PyTorch module (nn.Linear(..., 64))
LANE = 128       # TPU lane width; output columns are padded to a multiple of this


def _mlp_kernel(x_ref, w1_ref, w2_ref, w3_ref, b_ref, o_ref):
    """One (TILE_B, n_in) tile of games through the 3-layer MLP.

    x/w refs are bf16 (MXU-native); accumulation, bias-add and ReLU are f32.
    b_ref is a (3, n_out_padded) f32 slab: row 0 = b1 (padded), row 1 = b2
    (padded), row 2 = b3 (padded).  Output is (TILE_B, n_out_padded) f32.
    """
    bias_all = b_ref[...]                         # (3, n_out_padded) f32
    b1 = bias_all[0:1, :HIDDEN]                   # (1, 64)
    b2 = bias_all[1:2, :HIDDEN]                   # (1, 64)
    b3 = bias_all[2:3, :]                         # (1, n_out_padded)

    # layer 1: Linear(n_in, 64) + ReLU   (bf16 x bf16 -> f32 accumulate)
    h1 = jnp.dot(x_ref[...], w1_ref[...], preferred_element_type=jnp.float32)
    h1 = jnp.maximum(h1 + b1, 0.0).astype(jnp.bfloat16)

    # layer 2: Linear(64, 64) + ReLU
    h2 = jnp.dot(h1, w2_ref[...], preferred_element_type=jnp.float32)
    h2 = jnp.maximum(h2 + b2, 0.0).astype(jnp.bfloat16)

    # layer 3: Linear(64, n_out_padded), no activation (lane-dense store)
    o_ref[...] = jnp.dot(h2, w3_ref[...], preferred_element_type=jnp.float32) + b3


def game_eq_mlp(x, params, *, tile_b=256):
    """Forward pass of GameEqNeuralNetwork.

    x: (n_in,) for a single game (matches the PyTorch forward) or (B, n_in)
       for a batch of games.  Returns (n_out,) or (B, n_out) float32.
    """
    (w1, b1), (w2, b2), (w3, b3) = params
    single = (x.ndim == 1)
    if single:
        x = x[None, :]
    B, n_in = x.shape
    n_out = w3.shape[1]

    # --- lane-dense output: pad n_out up to a multiple of 128 with zero cols ---
    n_out_p = max(LANE, ((n_out + LANE - 1) // LANE) * LANE)
    w3p = jnp.pad(w3, ((0, 0), (0, n_out_p - n_out)))
    b3p = jnp.pad(b3, (0, n_out_p - n_out))

    # --- batch tiling: round B up to a multiple of tile_b (tile_b multiple of 8) ---
    if B < tile_b:
        tile_b = max(8, ((B + 7) // 8) * 8)
    Bp = ((B + tile_b - 1) // tile_b) * tile_b

    xb16 = x.astype(jnp.bfloat16)
    if Bp != B:
        xb16 = jnp.zeros((Bp, n_in), jnp.bfloat16).at[:B].set(xb16)

    # bf16 weights (MXU-native operands; f32 accumulation inside the kernel).
    w1b = w1.astype(jnp.bfloat16)
    w2b = w2.astype(jnp.bfloat16)
    w3b = w3p.astype(jnp.bfloat16)

    # Fold the three biases into one f32 (3, n_out_p) slab -> single DMA.
    def _pad_bias(b):
        return jnp.pad(b.astype(jnp.float32), (0, n_out_p - b.shape[0]))
    bias = jnp.stack([_pad_bias(b1), _pad_bias(b2), b3p.astype(jnp.float32)])

    grid = (Bp // tile_b,)
    const2d = lambda shape: pl.BlockSpec(shape, lambda i: (0, 0))

    flops = 2 * Bp * (n_in * HIDDEN + HIDDEN * HIDDEN + HIDDEN * n_out_p)
    bytes_accessed = (xb16.size * 2 + w1b.size * 2 + w2b.size * 2 + w3b.size * 2
                      + bias.size * 4 + Bp * n_out_p * 4)

    out = pl.pallas_call(
        _mlp_kernel,
        out_shape=jax.ShapeDtypeStruct((Bp, n_out_p), jnp.float32),
        grid=grid,
        in_specs=[
            pl.BlockSpec((tile_b, n_in), lambda i: (i, 0)),   # batch tile of games
            const2d(w1b.shape),                               # weights stay VMEM-resident
            const2d(w2b.shape),
            const2d(w3b.shape),
            const2d(bias.shape),                              # fused bias slab
        ],
        out_specs=pl.BlockSpec((tile_b, n_out_p), lambda i: (i, 0)),
        compiler_params=pltpu.CompilerParams(
            dimension_semantics=("parallel",),                # shards batch across TCs (v7x)
            vmem_limit_bytes=32 * 1024 * 1024,
        ),
        cost_estimate=pl.CostEstimate(
            flops=flops, transcendentals=0, bytes_accessed=bytes_accessed),
    )(xb16, w1b, w2b, w3b, bias)

    out = out[:B, :n_out]
    return out[0] if single else out


def init_params(key, n_in, hidden, n_out):
    """Deterministic init mimicking nn.Linear default (uniform +/- 1/sqrt(fan_in)).
    Weights are stored as (in_features, out_features)."""
    ks = jax.random.split(key, 6)

    def layer(kw, kb, fan_in, fan_out):
        bound = 1.0 / jnp.sqrt(jnp.float32(fan_in))
        w = jax.random.uniform(kw, (fan_in, fan_out), jnp.float32, -bound, bound)
        b = jax.random.uniform(kb, (fan_out,), jnp.float32, -bound, bound)
        return w, b

    return (
        layer(ks[0], ks[1], n_in, hidden),
        layer(ks[2], ks[3], hidden, hidden),
        layer(ks[4], ks[5], hidden, n_out),
    )


def entries_tensor_synthetic(key, batch, players, actions):
    # Synthetic stand-in for entries_tensor(nf_game): a batch of dense payoff
    # tensors of shape (players, actions, ..., actions).
    # TODO(synk): the dict->tensor scatter of entries_tensor is host-side game
    # construction with no Pallas equivalent; a dense random tensor is used here.
    shape = (batch, players) + (actions,) * players
    return jax.random.normal(key, shape, jnp.float32)


def _ref_forward(x, params, op_dtype):
    """Pure-JAX reference with the same operand dtype / f32 accumulation."""
    (w1, b1), (w2, b2), (w3, b3) = params
    h = x.astype(op_dtype)
    h = jnp.maximum(jnp.dot(h, w1.astype(op_dtype),
                            preferred_element_type=jnp.float32) + b1, 0.0)
    h = h.astype(op_dtype)
    h = jnp.maximum(jnp.dot(h, w2.astype(op_dtype),
                            preferred_element_type=jnp.float32) + b2, 0.0)
    h = h.astype(op_dtype)
    return jnp.dot(h, w3.astype(op_dtype),
                   preferred_element_type=jnp.float32) + b3


if __name__ == "__main__":
    players, actions, hidden = 2, 4, 64
    n_in = actions ** players * players      # 32
    n_out = actions * players                # 8
    batch = 512                              # games per call (2 grid tiles of 256)

    key = jax.random.PRNGKey(0)
    k_game, k_params = jax.random.split(key)

    games = entries_tensor_synthetic(k_game, batch, players, actions)
    xb = games.reshape(batch, -1)            # torch.flatten per game (row-major)
    params = init_params(k_params, n_in, hidden, n_out)

    # Batched forward.
    y = game_eq_mlp(xb, params)
    jax.block_until_ready(y)
    assert y.shape == (batch, n_out)

    # Single-game forward (matches the original module's forward signature).
    y0 = game_eq_mlp(xb[0], params)
    jax.block_until_ready(y0)
    assert y0.shape == (n_out,)

    # Tight check vs. a bf16-operand / f32-accumulate reference (same math path).
    y_ref_bf16 = _ref_forward(xb, params, jnp.bfloat16)
    assert jnp.allclose(y, y_ref_bf16, atol=1e-2, rtol=1e-2)
    # Looser sanity check vs. the full-f32 reference (bf16 quantization error).
    y_ref_f32 = _ref_forward(xb, params, jnp.float32)
    assert jnp.allclose(y, y_ref_f32, atol=1e-1, rtol=1e-1)
    # Single-game path agrees with batched row 0.
    assert jnp.allclose(y0, y[0], atol=1e-5, rtol=1e-5)

    print("KERNEL_OK")
</pallas_src>

<mosaic_0001>
module attributes {stable_mosaic.version = 11 : i64} {
  func.func @_mlp_kernel(%arg0: i32, %arg1: memref<256x32xbf16, #tpu.memory_space<vmem>>, %arg2: memref<32x64xbf16, #tpu.memory_space<vmem>>, %arg3: memref<64x64xbf16, #tpu.memory_space<vmem>>, %arg4: memref<64x128xbf16, #tpu.memory_space<vmem>>, %arg5: memref<3x128xf32, #tpu.memory_space<vmem>>, %arg6: memref<256x128xf32, #tpu.memory_space<vmem>>) attributes {dimension_semantics = [#tpu.dimension_semantics<parallel>], iteration_bounds = array<i64: 2>, scalar_prefetch = 0 : i64, scratch_operands = 0 : i64, tpu.core_type = #tpu.core_type<tc>, window_params = [{transform_indices = @transform_0, window_bounds = array<i64: 256, 32>}, {pipeline_mode = #tpu.pipeline_mode<synchronous>, transform_indices = @transform_1, window_bounds = array<i64: 32, 64>}, {pipeline_mode = #tpu.pipeline_mode<synchronous>, transform_indices = @transform_2, window_bounds = array<i64: 64, 64>}, {pipeline_mode = #tpu.pipeline_mode<synchronous>, transform_indices = @transform_3, window_bounds = array<i64: 64, 128>}, {pipeline_mode = #tpu.pipeline_mode<synchronous>, transform_indices = @transform_4, window_bounds = array<i64: 3, 128>}, {transform_indices = @transform_5, window_bounds = array<i64: 256, 128>}]} {
    %c0 = arith.constant 0 : index
    %c0_0 = arith.constant 0 : index
    %0 = vector.load %arg5[%c0, %c0_0] : memref<3x128xf32, #tpu.memory_space<vmem>>, vector<3x128xf32>
    %1 = vector.extract_strided_slice %0 {offsets = [0, 0], sizes = [1, 64], strides = [1, 1]} : vector<3x128xf32> to vector<1x64xf32>
    %2 = vector.extract_strided_slice %0 {offsets = [1, 0], sizes = [1, 64], strides = [1, 1]} : vector<3x128xf32> to vector<1x64xf32>
    %3 = vector.extract_strided_slice %0 {offsets = [2, 0], sizes = [1, 128], strides = [1, 1]} : vector<3x128xf32> to vector<1x128xf32>
    %c0_1 = arith.constant 0 : index
    %c0_2 = arith.constant 0 : index
    %4 = vector.load %arg1[%c0_1, %c0_2] : memref<256x32xbf16, #tpu.memory_space<vmem>>, vector<256x32xbf16>
    %c0_3 = arith.constant 0 : index
    %c0_4 = arith.constant 0 : index
    %5 = vector.load %arg2[%c0_3, %c0_4] : memref<32x64xbf16, #tpu.memory_space<vmem>>, vector<32x64xbf16>
    %cst = arith.constant dense<0.000000e+00> : vector<256x64xf32>
    %6 = tpu.matmul %4, %5, %cst {dimension_numbers = #tpu.dot_dimension_numbers<[1], [0], [0], [1], [0, 0, 1, 1], [], []>} : vector<256x32xbf16>, vector<32x64xbf16>, vector<256x64xf32> -> vector<256x64xf32>
    %7 = vector.broadcast %1 : vector<1x64xf32> to vector<256x64xf32>
    %8 = arith.addf %6, %7 : vector<256x64xf32>
    %cst_5 = arith.constant 0.000000e+00 : f32
    %9 = vector.broadcast %cst_5 : f32 to vector<256x64xf32>
    %10 = arith.maximumf %8, %9 : vector<256x64xf32>
    %11 = arith.truncf %10 : vector<256x64xf32> to vector<256x64xbf16>
    %c0_6 = arith.constant 0 : index
    %c0_7 = arith.constant 0 : index
    %12 = vector.load %arg3[%c0_6, %c0_7] : memref<64x64xbf16, #tpu.memory_space<vmem>>, vector<64x64xbf16>
    %cst_8 = arith.constant dense<0.000000e+00> : vector<256x64xf32>
    %13 = tpu.matmul %11, %12, %cst_8 {dimension_numbers = #tpu.dot_dimension_numbers<[1], [0], [0], [1], [0, 0, 1, 1], [], []>} : vector<256x64xbf16>, vector<64x64xbf16>, vector<256x64xf32> -> vector<256x64xf32>
    %14 = vector.broadcast %2 : vector<1x64xf32> to vector<256x64xf32>
    %15 = arith.addf %13, %14 : vector<256x64xf32>
    %cst_9 = arith.constant 0.000000e+00 : f32
    %16 = vector.broadcast %cst_9 : f32 to vector<256x64xf32>
    %17 = arith.maximumf %15, %16 : vector<256x64xf32>
    %18 = arith.truncf %17 : vector<256x64xf32> to vector<256x64xbf16>
    %c0_10 = arith.constant 0 : index
    %c0_11 = arith.constant 0 : index
    %19 = vector.load %arg4[%c0_10, %c0_11] : memref<64x128xbf16, #tpu.memory_space<vmem>>, vector<64x128xbf16>
    %cst_12 = arith.constant dense<0.000000e+00> : vector<256x128xf32>
    %20 = tpu.matmul %18, %19, %cst_12 {dimension_numbers = #tpu.dot_dimension_numbers<[1], [0], [0], [1], [0, 0, 1, 1], [], []>} : vector<256x64xbf16>, vector<64x128xbf16>, vector<256x128xf32> -> vector<256x128xf32>
    %21 = vector.broadcast %3 : vector<1x128xf32> to vector<256x128xf32>
    %22 = arith.addf %20, %21 : vector<256x128xf32>
    %c0_13 = arith.constant 0 : index
    %c0_14 = arith.constant 0 : index
    %23 = vector.load %arg6[%c0_13, %c0_14] : memref<256x128xf32, #tpu.memory_space<vmem>>, vector<256x128xf32>
    tpu.vector_store %arg6[%c0_13, %c0_14], %22 {strides = array<i32>} : memref<256x128xf32, #tpu.memory_space<vmem>>, vector<256x128xf32>,
    return
  }
  func.func @transform_0(%arg0: i32) -> (i32, i32) {
    %c0_i32 = arith.constant 0 : i32
    %c0_i32_0 = arith.constant 0 : i32
    return %arg0, %c0_i32 : i32, i32
  }
  func.func @transform_1(%arg0: i32) -> (i32, i32) {
    %c0_i32 = arith.constant 0 : i32
    %c0_i32_0 = arith.constant 0 : i32
    %c0_i32_1 = arith.constant 0 : i32
    return %c0_i32, %c0_i32_0 : i32, i32
  }
  func.func @transform_2(%arg0: i32) -> (i32, i32) {
    %c0_i32 = arith.constant 0 : i32
    %c0_i32_0 = arith.constant 0 : i32
    %c0_i32_1 = arith.constant 0 : i32
    return %c0_i32, %c0_i32_0 : i32, i32
  }
  func.func @transform_3(%arg0: i32) -> (i32, i32) {
    %c0_i32 = arith.constant 0 : i32
    %c0_i32_0 = arith.constant 0 : i32
    %c0_i32_1 = arith.constant 0 : i32
    return %c0_i32, %c0_i32_0 : i32, i32
  }
  func.func @transform_4(%arg0: i32) -> (i32, i32) {
    %c0_i32 = arith.constant 0 : i32
    %c0_i32_0 = arith.constant 0 : i32
    %c0_i32_1 = arith.constant 0 : i32
    return %c0_i32, %c0_i32_0 : i32, i32
  }
  func.func @transform_5(%arg0: i32) -> (i32, i32) {
    %c0_i32 = arith.constant 0 : i32
    %c0_i32_0 = arith.constant 0 : i32
    return %arg0, %c0_i32 : i32, i32
  }
}

</mosaic_0001>

<bundles_post_ra>
// kernel: tpu_custom_call.1
= control target key start
LH: loop header
LB: loop body
LE: loop exit
PB: predicated region body
PF: predicated region fallthrough
CT: control target
= control target key end

     0   :  { %10 = vsyncpa [#allocation3], 0  ;;  %s2052_s0 = inlined_call_operand.vmem [shape: bf16[512,32], index: 0, kind: input, shape index: {}]   ;;  %s2053_s1 = inlined_call_operand.vmem [shape: bf16[32,64], index: 1, kind: input, shape index: {}]   ;;  %s2054_s2 = inlined_call_operand.vmem [shape: bf16[64,64], index: 2, kind: input, shape index: {}]   ;;  %s2055_s3 = inlined_call_operand.vmem [shape: bf16[64,128], index: 3, kind: input, shape index: {}]   ;;  %s2056_s4 = inlined_call_operand.vmem [shape: f32[3,128], index: 4, kind: input, shape index: {}]   ;;  %s2057_s5 = inlined_call_operand.hbm [shape: f32[512,128], index: 5, kind: output, shape index: {}]  }
   0x1   :  { %12 = vsyncpa [#allocation3 + $0x1], 0  ;;  %s1694_s18 = smov 0   ;;  %s1696_s19 = smov 0  }
   0x2   :  { %s1698_s20 = smov 0   ;;  %s1700_s21 = smov 0  }
   0x3 LB: > { %s1715_s22 = sadd.s32 4294967295, %s1659_s21   ;;  %s1265_s23 = sadd.s32 4294967294, %s1659_s21   ;;  %s1659_s21 = sphi %s1700_s21, %s2063_s21   ;;  %s1655_s20 = sphi %s1698_s20, %s2062_s20   ;;  %s1651_s19 = sphi %s1696_s19, %s2061_s19   ;;  %s1647_s18 = sphi %s1694_s18, %s2060_s18  }
   0x4   : > { %s1719_s24 = sadd.s32 1, %s1659_s21   ;;  %s135_s25 = sadd.s32 1, %s1655_s20 }
   0x5   : > { %s132_s26 = ssub.s32 %s1659_s21, %s1719_s24  ;;  %p145_p0 = scmp.ne.s32.totalorder %s1655_s20, %s1651_s19 }
   0x6   : > { %p133_p1 = scmp.eq.s32.totalorder %s132_s26, 0  ;;  %p146_p2 = scmp.eq.s32.totalorder %s1715_s22, 1 }
   0x7   : > { %p151_p3 = scmp.ne.s32.totalorder %s1651_s19, %s1647_s18  ;;  %p152_p4 = scmp.eq.s32.totalorder %s1265_s23, 1 }
   0x8   : > { %s1730_s27 = scalar_select %p133_p1, %s1655_s20, %s135_s25  }
   0x9   : > { %p1732_p5 = por %p146_p2, %p145_p0  ;;  %p1736_p6 = por %p152_p4, %p151_p3 }
   0xa   : > { %p1268_p7 = scmp.ge.s32.totalorder %s1659_s21, 1  ;;  %p191_p8 = scmp.lt.s32.totalorder %s1659_s21, 3 }
   0xc   : > { %p192_p9 = pnand %p1268_p7, %p191_p8 }
   0xd   : > { %v1571_v0 = vld [vmem:[%s2053_s1] sm:$0xff] (!%p192_p9)   ;;  %s1270_s7 = sshll.u32 (!%p192_p9), %s1715_s22, 5  ;;  %v1572_v1 = vld [vmem:[%s2053_s1 + $0x8] sm:$0xff] (!%p192_p9)   ;;  %vm360_vm0 = vcmask (!%p192_p9), 261120   ;;  %v1591_v12 = vld [vmem:[%s2054_s2 + $0x10] sm:$0xff] (!%p192_p9)   ;;  %v264_v25 = vlaneseq (!%p192_p9)  ;;  %vm654_vm1 = vcmask (!%p192_p9), 523264  }
   0xe   : > { %195 = sbr.rel (%p192_p9) target bundleno = 758 (0x2f6), region = 40  ;;  %p220_p10 = scmp.lt.s32.totalorder (!%p192_p9), %s1270_s7, 63  ;;  %1410 = vmatprep.subr.bf16.mxu0 (!%p192_p9), %v1571_v0  ;;  %1526 = vmatprep.subr.bf16.mxu1 (!%p192_p9), %v1571_v0  ;;  %v1589_v2 = vld [vmem:[%s2054_s2] sm:$0xff] (!%p192_p9)   ;;  %v1590_v9 = vld [vmem:[%s2054_s2 + $0x8] sm:$0xff] (!%p192_p9)   ;;  %v1592_v21 = vld [vmem:[%s2054_s2 + $0x18] sm:$0xff] (!%p192_p9)  }
   0xf   : > { %1411 = vmatpush3.bf16.msra.mxu0 (!%p192_p9), %v1571_v0  ;;  %1528 = vmatpush3.bf16.msra.mxu1 (!%p192_p9), %v1571_v0  ;;  %v1593_v22 = vld [vmem:[%s2055_s3] sm:$0xff] (!%p192_p9)   ;;  %v1594_v23 = vld [vmem:[%s2055_s3 + $0x8] sm:$0xff] (!%p192_p9)   ;;  %v1595_v24 = vld [vmem:[%s2055_s3 + $0x10] sm:$0xff] (!%p192_p9)   ;;  %v1807_v26 = vshrl.u32 (!%p192_p9), %v264_v25, 7  ;;  %s216_s16 = sand.u32 (!%p192_p9), 1, %s1651_s19   ;;  %s1351_s25 = sshll.u32 (!%p192_p9), %s1715_s22, 12 }
  0x10   : > { %1412 = vmatprep.subr.bf16.mxu0 (!%p192_p9), %v1572_v1  ;;  %1527 = vmatprep.subr.bf16.mxu1 (!%p192_p9), %v1572_v1  ;;  %v1813_v28 = vld [vmem:[%s2056_s4] sm:$0x7] (!%p192_p9)  ;;  %s1269_s17 = sshll.u32 (!%p192_p9), %s216_s16, 8  ;;  %s2011_s22 = scalar_lea.sflag (!%p192_p9), [#allocation3], %s216_s16 }
  0x11   : > { %v266_v27 = vsub.s32 (!%p192_p9), 0, %v1807_v26  ;;  %s1936_s23 = scalar_lea.vmem (!%p192_p9), [#allocation2], %s1269_s17  ;;  %s1661_s9 = smov (!%p192_p9), [#allocation2]  }
  0x12   : > { %s1203_s26 = sshll.u32 (!%p192_p9), %s1936_s23, 4  ;;  %s1601_s10 = sshll.u32 (!%p192_p9), %s1661_s9, 4  ;;  %s2003_s26 = int_to_ptr.vmem [resolvable:$true] %s1203_s26  ;;  %s1602_s10 = int_to_ptr.vmem [resolvable:$false] %s1601_s10 }
  0x13   : > { %1413 = vmatpush3.bf16.msra.mxu0 (!%p192_p9), %v1572_v1  ;;  %1529 = vmatpush3.bf16.msra.mxu1 (!%p192_p9), %v1572_v1  ;;  %v1816_v29 = vrot.slane (!%p192_p9), %v1813_v28, %v266_v27  ;;  %s1597_s8 = scalar_lea.vmem (!%p192_p9), %s2003_s26, 4096  ;;  %s1603_s11 = scalar_lea.vmem (!%p192_p9), %s1602_s10, 8192 }
  0x14   : > { %1446 = vmatprep.subr.bf16.mxu1 (!%p192_p9), %v1589_v2  ;;  %1486 = vmatprep.subr.bf16.mxu0 (!%p192_p9), %v1593_v22  ;;  %p1598_p11 = scmp.ne.s32.totalorder (!%p192_p9), %s2003_s26, %s1597_s8  ;;  %p1604_p0 = scmp.lt.s32.totalorder (!%p192_p9), %s2003_s26, %s1602_s10 }
  0x15   : > { %s2065_s7 = smov (!%p220_p10, %s1270_s7), 63  ;;  %p1605_p1 = scmp.lt.s32.totalorder %s1603_s11, %s1597_s8 }
  0x16   : > { %s1271_s12 = sshll.u32 %s2065_s7, 2  ;;  %s2001_s7 = scalar_lea.hbm %s2057_s5, %s1351_s25 }
  0x17   : > { %s1755_s15 = scalar_lea.vmem %s2052_s0, %s1271_s12  ;;  %p1599_p12 = pnand %p1598_p11, %p1732_p5 }
  0x18   : > { %v1573_v3 = vld [vmem:[%s1755_s15] sm:$0xff]   ;;  %v1574_v4 = vld [vmem:[%s1755_s15 + $0x8] sm:$0xff]   ;;  %v1575_v5 = vld [vmem:[%s1755_s15 + $0x10] sm:$0xff]   ;;  %p1606_p2 = por %p1605_p1, %p1604_p0 }
  0x19   : > { %1414 = vmatprep.mubr.msk.bf16.mxu0 %vm360_vm0, %v1573_v3  ;;  %v1576_v6 = vld [vmem:[%s1755_s15 + $0x18] sm:$0xff]   ;;  %v1577_v7 = vld [vmem:[%s1755_s15 + $0x20] sm:$0xff]   ;;  %v1582_v10 = vld [vmem:[%s1755_s15 + $0x48] sm:$0xff]   ;;  %p1600_p13 = pneg %p1599_p12 }
  0x1a   : > { %1415 = vmatmul.mubr.msk.bf16.vlgmr.msra.gmra.mrb[0].mxu0 %vm360_vm0, %v1574_v4  ;;  %v1581_v8 = vld [vmem:[%s1755_s15 + $0x40] sm:$0xff]   ;;  %v1583_v11 = vld [vmem:[%s1755_s15 + $0x50] sm:$0xff]   ;;  %v1578_v13 = vld [vmem:[%s1755_s15 + $0x28] sm:$0xff]  }
  0x1b   : > { %1418 = vmatprep.mubr.msk.bf16.mxu0 %vm360_vm0, %v1575_v5  ;;  %1430 = vmatprep.mubr.msk.bf16.mxu1 %vm360_vm0, %v1581_v8  ;;  %v1579_v14 = vld [vmem:[%s1755_s15 + $0x30] sm:$0xff]   ;;  %v1584_v15 = vld [vmem:[%s1755_s15 + $0x58] sm:$0xff]   ;;  %v1585_v16 = vld [vmem:[%s1755_s15 + $0x60] sm:$0xff]   ;;  %p1607_p3 = pnand %p1606_p2, %p1600_p13 }
  0x1c   : > { %1431 = vmatmul.mubr.msk.bf16.vlgmr.msra.gmra.mrb[0].mxu1 %vm360_vm0, %v1582_v10  ;;  %v1580_v17 = vld [vmem:[%s1755_s15 + $0x38] sm:$0xff]   ;;  %v1586_v18 = vld [vmem:[%s1755_s15 + $0x68] sm:$0xff]   ;;  %v1587_v19 = vld [vmem:[%s1755_s15 + $0x70] sm:$0xff]   ;;  %1487 = vmatpush3.bf16.msra.mxu0 %v1593_v22 }
  0x1d   : > { %1434 = vmatprep.mubr.msk.bf16.mxu1 %vm360_vm0, %v1583_v11  ;;  %1447 = vmatpush3.bf16.msra.mxu1 %v1589_v2  ;;  %v1588_v20 = vld [vmem:[%s1755_s15 + $0x78] sm:$0xff]  }
  0x1e   : > { %1448 = vmatprep.subr.bf16.mxu1 %v1590_v9  ;;  %1488 = vmatprep.subr.bf16.mxu0 %v1594_v23 }
  0x20   : > { %1489 = vmatpush3.bf16.msra.mxu0 %v1594_v23 }
  0x21   : > { %1449 = vmatpush3.bf16.msra.mxu1 %v1590_v9  ;;  %1490 = vmatprep.subr.bf16.mxu0 %v1595_v24 }
  0x22   : > { %1419 = vmatmul.mubr.msk.bf16.gmra.mrb[4].mxu0 %vm360_vm0, %v1576_v6  ;;  %1450 = vmatprep.subr.bf16.mxu1 %v1591_v12 }
  0x23   : > { %1422 = vmatprep.mubr.msk.bf16.mxu0 %vm360_vm0, %v1577_v7 }
  0x24   : > { %1435 = vmatmul.mubr.msk.bf16.gmra.mrb[4].mxu1 %vm360_vm0, %v1584_v15  ;;  %1491 = vmatpush3.bf16.msra.mxu0 %v1595_v24 }
  0x25   : > { %1438 = vmatprep.mubr.msk.bf16.mxu1 %vm360_vm0, %v1585_v16  ;;  %1451 = vmatpush3.bf16.msra.mxu1 %v1591_v12 }
  0x26   : > { %1452 = vmatprep.subr.bf16.mxu1 %v1592_v21 }
  0x29   : > { %1453 = vmatpush3.bf16.msra.mxu1 %v1592_v21 }
  0x2a   : > { %1423 = vmatmul.mubr.msk.bf16.gmra.mrb[8].mxu0 %vm360_vm0, %v1578_v13 }
  0x2b   : > { %1426 = vmatprep.mubr.msk.bf16.mxu0 %vm360_vm0, %v1579_v14 }
  0x2c   : > { %1439 = vmatmul.mubr.msk.bf16.gmra.mrb[8].mxu1 %vm360_vm0, %v1586_v18 }
  0x2d   : > { %1442 = vmatprep.mubr.msk.bf16.mxu1 %vm360_vm0, %v1587_v19 }
  0x32   : > { %1427 = vmatmul.mubr.msk.bf16.gmra.mrb[12].mxu0 %vm360_vm0, %v1580_v17 }
  0x34   : > { %1443 = vmatmul.mubr.msk.bf16.gmra.mrb[12].mxu1 %vm360_vm0, %v1588_v20 }
  0xed   : > { %v1416_v30 = vpop.f32.mrb[0].mxu0 }
  0xee   : > { %v452_v31 = vadd.f32 %v1416_v30, %v1816_v29  ;;  %v443_v32 = vpop.f32.mrb[1].mxu0 }
  0xef   : > { %v444_v33 = vadd.f32 %v443_v32, %v1816_v29  ;;  %v1417_v34 = vpop.f32.mrb[2].mxu0  ;;  %v1432_v45 = vpop.f32.mrb[0].mxu1 }
  0xf0   : > { %v455_v35 = vadd.f32 %v1417_v34, %v1816_v29  ;;  %v446_v36 = vpop.f32.mrb[3].mxu0  ;;  %v572_v38 = vmax.f32 %v452_v31, 0.0  ;;  %v516_v48 = vadd.f32 %v1432_v45, %v1816_v29  ;;  %v507_v49 = vpop.f32.mrb[1].mxu1 }
  0xf1   : > { %v447_v37 = vadd.f32 %v446_v36, %v1816_v29  ;;  %v570_v40 = vmax.f32 %v444_v33, 0.0  ;;  %v508_v52 = vadd.f32 %v507_v49, %v1816_v29  ;;  %v1433_v53 = vpop.f32.mrb[2].mxu1 }
  0xf2   : > { %v573_v39 = vmax.f32 %v455_v35, 0.0  ;;  %v588_v56 = vmax.f32 %v516_v48, 0.0  ;;  %v519_v57 = vadd.f32 %v1433_v53, %v1816_v29  ;;  %v510_v58 = vpop.f32.mrb[3].mxu1 }
  0xf3   : > { %v571_v41 = vmax.f32 %v447_v37, 0.0  ;;  %v586_v60 = vmax.f32 %v508_v52, 0.0  ;;  %v511_v61 = vadd.f32 %v510_v58, %v1816_v29 }
  0xf4   : > { %v603_v42 = vpack.c.bf16 %v573_v39, %v572_v38  ;;  %v589_v0 = vmax.f32 %v519_v57, 0.0 }
  0xf5   : > { %v602_v43 = vpack.c.bf16 %v571_v41, %v570_v40  ;;  %v1420_v44 = vpop.f32.mrb[4].mxu0  ;;  %v587_v3 = vmax.f32 %v511_v61, 0.0 }
  0xf6   : > { %v468_v46 = vadd.f32 %v1420_v44, %v1816_v29  ;;  %v459_v47 = vpop.f32.mrb[5].mxu0  ;;  %v1832_v5 = vpack.c.bf16 %v589_v0, %v588_v56 }
  0xf7   : > { %v460_v50 = vadd.f32 %v459_v47, %v1816_v29  ;;  %v1421_v51 = vpop.f32.mrb[6].mxu0  ;;  %1454 = vmatprep.mubr.msk.bf16.mxu1 %vm654_vm1, %v602_v43  ;;  %v1834_v8 = vpack.c.bf16 %v587_v3, %v586_v60  ;;  %v1436_v9 = vpop.f32.mrb[4].mxu1 }
  0xf8   : > { %v471_v54 = vadd.f32 %v1421_v51, %v1816_v29  ;;  %v462_v55 = vpop.f32.mrb[7].mxu0  ;;  %1455 = vmatmul.mubr.msk.bf16.vlgmr.msra.gmra.mrb[16].mxu1 %vm654_vm1, %v603_v42  ;;  %v576_v62 = vmax.f32 %v468_v46, 0.0  ;;  %v532_v12 = vadd.f32 %v1436_v9, %v1816_v29  ;;  %v523_v13 = vpop.f32.mrb[5].mxu1 }
  0xf9   : > { %v463_v59 = vadd.f32 %v462_v55, %v1816_v29  ;;  %v574_v1 = vmax.f32 %v460_v50, 0.0  ;;  %v524_v16 = vadd.f32 %v523_v13, %v1816_v29  ;;  %v1437_v17 = vpop.f32.mrb[6].mxu1 }
  0xfa   : > { %v577_v63 = vmax.f32 %v471_v54, 0.0  ;;  %v592_v20 = vmax.f32 %v532_v12, 0.0  ;;  %v535_v21 = vadd.f32 %v1437_v17, %v1816_v29  ;;  %v526_v22 = vpop.f32.mrb[7].mxu1 }
  0xfb   : > { %v575_v2 = vmax.f32 %v463_v59, 0.0  ;;  %v590_v24 = vmax.f32 %v524_v16, 0.0  ;;  %v527_v25 = vadd.f32 %v526_v22, %v1816_v29 }
  0xfc   : > { %v605_v4 = vpack.c.bf16 %v577_v63, %v576_v62  ;;  %v593_v31 = vmax.f32 %v535_v21, 0.0 }
  0xfd   : > { %v604_v6 = vpack.c.bf16 %v575_v2, %v574_v1  ;;  %v1424_v7 = vpop.f32.mrb[8].mxu0  ;;  %v591_v34 = vmax.f32 %v527_v25, 0.0 }
  0xfe   : > { %v484_v10 = vadd.f32 %v1424_v7, %v1816_v29  ;;  %v475_v11 = vpop.f32.mrb[9].mxu0  ;;  %v613_v36 = vpack.c.bf16 %v593_v31, %v592_v20 }
  0xff   : > { %v476_v14 = vadd.f32 %v475_v11, %v1816_v29  ;;  %v1425_v15 = vpop.f32.mrb[10].mxu0  ;;  %1458 = vmatprep.mubr.msk.bf16.mxu1 %vm654_vm1, %v604_v6  ;;  %v612_v39 = vpack.c.bf16 %v591_v34, %v590_v24  ;;  %v1440_v40 = vpop.f32.mrb[8].mxu1 }
 0x100   : > { %v487_v18 = vadd.f32 %v1425_v15, %v1816_v29  ;;  %v478_v19 = vpop.f32.mrb[11].mxu0  ;;  %1459 = vmatmul.mubr.msk.bf16.gmra.mrb[20].mxu1 %vm654_vm1, %v605_v4  ;;  %v580_v27 = vmax.f32 %v484_v10, 0.0  ;;  %v548_v43 = vadd.f32 %v1440_v40, %v1816_v29  ;;  %v539_v44 = vpop.f32.mrb[9].mxu1 }
 0x101   : > { %v479_v23 = vadd.f32 %v478_v19, %v1816_v29  ;;  %v578_v32 = vmax.f32 %v476_v14, 0.0  ;;  %v540_v47 = vadd.f32 %v539_v44, %v1816_v29  ;;  %v1441_v48 = vpop.f32.mrb[10].mxu1 }
 0x102   : > { %v581_v30 = vmax.f32 %v487_v18, 0.0  ;;  %v596_v51 = vmax.f32 %v548_v43, 0.0  ;;  %v551_v52 = vadd.f32 %v1441_v48, %v1816_v29  ;;  %v542_v53 = vpop.f32.mrb[11].mxu1 }
 0x103   : > { %v579_v33 = vmax.f32 %v479_v23, 0.0  ;;  %v594_v55 = vmax.f32 %v540_v47, 0.0  ;;  %v543_v56 = vadd.f32 %v542_v53, %v1816_v29 }
 0x104   : > { %v607_v35 = vpack.c.bf16 %v581_v30, %v580_v27  ;;  %v597_v59 = vmax.f32 %v551_v52, 0.0 }
 0x105   : > { %v606_v37 = vpack.c.bf16 %v579_v33, %v578_v32  ;;  %v1428_v38 = vpop.f32.mrb[12].mxu0  ;;  %v595_v62 = vmax.f32 %v543_v56, 0.0 }
 0x106   : > { %v500_v41 = vadd.f32 %v1428_v38, %v1816_v29  ;;  %v491_v42 = vpop.f32.mrb[13].mxu0  ;;  %v615_v0 = vpack.c.bf16 %v597_v59, %v596_v51 }
 0x107   : > { %v492_v45 = vadd.f32 %v491_v42, %v1816_v29  ;;  %v1429_v46 = vpop.f32.mrb[14].mxu0  ;;  %1462 = vmatprep.mubr.msk.bf16.mxu1 %vm654_vm1, %v606_v37  ;;  %v614_v2 = vpack.c.bf16 %v595_v62, %v594_v55  ;;  %v1444_v3 = vpop.f32.mrb[12].mxu1 }
 0x108   : > { %v503_v49 = vadd.f32 %v1429_v46, %v1816_v29  ;;  %v494_v50 = vpop.f32.mrb[15].mxu0  ;;  %1463 = vmatmul.mubr.msk.bf16.gmra.mrb[24].mxu1 %vm654_vm1, %v607_v35  ;;  %v584_v57 = vmax.f32 %v500_v41, 0.0  ;;  %v564_v4 = vadd.f32 %v1444_v3, %v1816_v29  ;;  %v555_v6 = vpop.f32.mrb[13].mxu1 }
 0x109   : > { %v495_v54 = vadd.f32 %v494_v50, %v1816_v29  ;;  %v582_v60 = vmax.f32 %v492_v45, 0.0  ;;  %v556_v7 = vadd.f32 %v555_v6, %v1816_v29  ;;  %v1445_v9 = vpop.f32.mrb[14].mxu1 }
 0x10a   : > { %v585_v58 = vmax.f32 %v503_v49, 0.0  ;;  %v600_v10 = vmax.f32 %v564_v4, 0.0  ;;  %v567_v11 = vadd.f32 %v1445_v9, %v1816_v29  ;;  %v558_v12 = vpop.f32.mrb[15].mxu1 }
 0x10b   : > { %v583_v61 = vmax.f32 %v495_v54, 0.0  ;;  %v598_v13 = vmax.f32 %v556_v7, 0.0  ;;  %v559_v14 = vadd.f32 %v558_v12, %v1816_v29  ;;  %v1596_v29 = vld [vmem:[%s2055_s3 + $0x18] sm:$0xff]  }
 0x10c   : > { %v609_v63 = vpack.c.bf16 %v585_v58, %v584_v57  ;;  %v601_v15 = vmax.f32 %v567_v11, 0.0  ;;  %1492 = vmatprep.subr.bf16.mxu0 %v1596_v29 }
 0x10d   : > { %v608_v1 = vpack.c.bf16 %v583_v61, %v582_v60  ;;  %v599_v16 = vmax.f32 %v559_v14, 0.0  ;;  %1493 = vmatpush3.bf16.msra.mxu0 %v1596_v29 }
 0x10e   : > { %v617_v17 = vpack.c.bf16 %v601_v15, %v600_v10 }
 0x10f   : > { %1466 = vmatprep.mubr.msk.bf16.mxu1 %vm654_vm1, %v608_v1  ;;  %v616_v18 = vpack.c.bf16 %v599_v16, %v598_v13 }
 0x110   : > { %1467 = vmatmul.mubr.msk.bf16.gmra.mrb[28].mxu1 %vm654_vm1, %v609_v63 }
 0x111   : > { %1470 = vmatprep.mubr.msk.bf16.mxu1 %vm654_vm1, %v1834_v8 }
 0x118   : > { %1471 = vmatmul.mubr.msk.bf16.gmra.mrb[32].mxu1 %vm654_vm1, %v1832_v5  ;;  %v628_v5 = vsub.s32 1, %v1807_v26 }
 0x119   : > { %1474 = vmatprep.mubr.msk.bf16.mxu1 %vm654_vm1, %v612_v39 }
 0x11a   : > { %v1877_v8 = vrot.slane %v1813_v28, %v628_v5 }
 0x120   : > { %1475 = vmatmul.mubr.msk.bf16.gmra.mrb[36].mxu1 %vm654_vm1, %v613_v36 }
 0x121   : > { %1478 = vmatprep.mubr.msk.bf16.mxu1 %vm654_vm1, %v614_v2 }
 0x128   : > { %1479 = vmatmul.mubr.msk.bf16.gmra.mrb[40].mxu1 %vm654_vm1, %v615_v0 }
 0x129   : > { %1482 = vmatprep.mubr.msk.bf16.mxu1 %vm654_vm1, %v616_v18 }
 0x130   : > { %1483 = vmatmul.mubr.msk.bf16.gmra.mrb[44].mxu1 %vm654_vm1, %v617_v17 }
 0x1cb   : > { %v1456_v19 = vpop.f32.mrb[16].mxu1 }
 0x1cc   : > { %v746_v20 = vadd.f32 %v1456_v19, %v1877_v8  ;;  %v737_v21 = vpop.f32.mrb[17].mxu1 }
 0x1cd   : > { %v738_v22 = vadd.f32 %v737_v21, %v1877_v8  ;;  %v1457_v23 = vpop.f32.mrb[18].mxu1 }
 0x1ce   : > { %v749_v24 = vadd.f32 %v1457_v23, %v1877_v8  ;;  %v740_v25 = vpop.f32.mrb[19].mxu1  ;;  %v866_v30 = vmax.f32 %v746_v20, 0.0 }
 0x1cf   : > { %v741_v27 = vadd.f32 %v740_v25, %v1877_v8  ;;  %v864_v32 = vmax.f32 %v738_v22, 0.0 }
 0x1d0   : > { %v867_v31 = vmax.f32 %v749_v24, 0.0 }
 0x1d1   : > { %v865_v33 = vmax.f32 %v741_v27, 0.0 }
 0x1d2   : > { %v897_v34 = vpack.c.bf16 %v867_v31, %v866_v30 }
 0x1d3   : > { %v896_v35 = vpack.c.bf16 %v865_v33, %v864_v32  ;;  %v1460_v36 = vpop.f32.mrb[20].mxu1 }
 0x1d4   : > { %v762_v37 = vadd.f32 %v1460_v36, %v1877_v8  ;;  %v753_v38 = vpop.f32.mrb[21].mxu1 }
 0x1d5   : > { %v754_v39 = vadd.f32 %v753_v38, %v1877_v8  ;;  %v1461_v40 = vpop.f32.mrb[22].mxu1  ;;  %1494 = vmatprep.mubr.msk.bf16.mxu0 %vm654_vm1, %v896_v35 }
 0x1d6   : > { %v765_v41 = vadd.f32 %v1461_v40, %v1877_v8  ;;  %v756_v42 = vpop.f32.mrb[23].mxu1  ;;  %1495 = vmatmul.mubr.msk.bf16.vlgmr.msra.gmra.mrb[16].mxu0 %vm654_vm1, %v897_v34  ;;  %v870_v44 = vmax.f32 %v762_v37, 0.0 }
 0x1d7   : > { %v757_v43 = vadd.f32 %v756_v42, %v1877_v8  ;;  %v868_v46 = vmax.f32 %v754_v39, 0.0 }
 0x1d8   : > { %v871_v45 = vmax.f32 %v765_v41, 0.0 }
 0x1d9   : > { %v869_v47 = vmax.f32 %v757_v43, 0.0 }
 0x1da   : > { %v899_v48 = vpack.c.bf16 %v871_v45, %v870_v44 }
 0x1db   : > { %v898_v49 = vpack.c.bf16 %v869_v47, %v868_v46  ;;  %v1464_v50 = vpop.f32.mrb[24].mxu1 }
 0x1dc   : > { %v778_v51 = vadd.f32 %v1464_v50, %v1877_v8  ;;  %v769_v52 = vpop.f32.mrb[25].mxu1 }
 0x1dd   : > { %v770_v53 = vadd.f32 %v769_v52, %v1877_v8  ;;  %v1465_v54 = vpop.f32.mrb[26].mxu1  ;;  %1498 = vmatprep.mubr.msk.bf16.mxu0 %vm654_vm1, %v898_v49 }
 0x1de   : > { %v781_v55 = vadd.f32 %v1465_v54, %v1877_v8  ;;  %v772_v56 = vpop.f32.mrb[27].mxu1  ;;  %1499 = vmatmul.mubr.msk.bf16.gmra.mrb[20].mxu0 %vm654_vm1, %v899_v48  ;;  %v874_v58 = vmax.f32 %v778_v51, 0.0 }
 0x1df   : > { %v773_v57 = vadd.f32 %v772_v56, %v1877_v8  ;;  %v872_v60 = vmax.f32 %v770_v53, 0.0 }
 0x1e0   : > { %v875_v59 = vmax.f32 %v781_v55, 0.0 }
 0x1e1   : > { %v873_v61 = vmax.f32 %v773_v57, 0.0 }
 0x1e2   : > { %v901_v62 = vpack.c.bf16 %v875_v59, %v874_v58 }
 0x1e3   : > { %v900_v63 = vpack.c.bf16 %v873_v61, %v872_v60  ;;  %v1468_v0 = vpop.f32.mrb[28].mxu1 }
 0x1e4   : > { %v794_v1 = vadd.f32 %v1468_v0, %v1877_v8  ;;  %v785_v2 = vpop.f32.mrb[29].mxu1 }
 0x1e5   : > { %v786_v3 = vadd.f32 %v785_v2, %v1877_v8  ;;  %v1469_v4 = vpop.f32.mrb[30].mxu1  ;;  %1502 = vmatprep.mubr.msk.bf16.mxu0 %vm654_vm1, %v900_v63 }
 0x1e6   : > { %v797_v6 = vadd.f32 %v1469_v4, %v1877_v8  ;;  %v788_v7 = vpop.f32.mrb[31].mxu1  ;;  %1503 = vmatmul.mubr.msk.bf16.gmra.mrb[24].mxu0 %vm654_vm1, %v901_v62  ;;  %v878_v10 = vmax.f32 %v794_v1, 0.0 }
 0x1e7   : > { %v789_v9 = vadd.f32 %v788_v7, %v1877_v8  ;;  %v876_v12 = vmax.f32 %v786_v3, 0.0 }
 0x1e8   : > { %v879_v11 = vmax.f32 %v797_v6, 0.0 }
 0x1e9   : > { %v877_v13 = vmax.f32 %v789_v9, 0.0 }
 0x1ea   : > { %v903_v14 = vpack.c.bf16 %v879_v11, %v878_v10  ;;  %v922_v11 = vsub.s32 2, %v1807_v26 }
 0x1eb   : > { %v902_v15 = vpack.c.bf16 %v877_v13, %v876_v12  ;;  %v1472_v16 = vpop.f32.mrb[32].mxu1 }
 0x1ec   : > { %v810_v17 = vadd.f32 %v1472_v16, %v1877_v8  ;;  %v801_v18 = vpop.f32.mrb[33].mxu1  ;;  %v1932_v12 = vrot.slane %v1813_v28, %v922_v11 }
 0x1ed   : > { %v802_v29 = vadd.f32 %v801_v18, %v1877_v8  ;;  %v1473_v5 = vpop.f32.mrb[34].mxu1  ;;  %1506 = vmatprep.mubr.msk.bf16.mxu0 %vm654_vm1, %v902_v15 }
 0x1ee   : > { %v813_v19 = vadd.f32 %v1473_v5, %v1877_v8  ;;  %v804_v20 = vpop.f32.mrb[35].mxu1  ;;  %1507 = vmatmul.mubr.msk.bf16.gmra.mrb[28].mxu0 %vm654_vm1, %v903_v14  ;;  %v882_v22 = vmax.f32 %v810_v17, 0.0 }
 0x1ef   : > { %v805_v21 = vadd.f32 %v804_v20, %v1877_v8  ;;  %v880_v24 = vmax.f32 %v802_v29, 0.0 }
 0x1f0   : > { %v883_v23 = vmax.f32 %v813_v19, 0.0 }
 0x1f1   : > { %v881_v25 = vmax.f32 %v805_v21, 0.0 }
 0x1f2   : > { %v905_v27 = vpack.c.bf16 %v883_v23, %v882_v22 }
 0x1f3   : > { %v904_v30 = vpack.c.bf16 %v881_v25, %v880_v24  ;;  %v1476_v31 = vpop.f32.mrb[36].mxu1 }
 0x1f4   : > { %v826_v32 = vadd.f32 %v1476_v31, %v1877_v8  ;;  %v817_v33 = vpop.f32.mrb[37].mxu1 }
 0x1f5   : > { %v818_v34 = vadd.f32 %v817_v33, %v1877_v8  ;;  %v1477_v35 = vpop.f32.mrb[38].mxu1  ;;  %1510 = vmatprep.mubr.msk.bf16.mxu0 %vm654_vm1, %v904_v30 }
 0x1f6   : > { %v829_v36 = vadd.f32 %v1477_v35, %v1877_v8  ;;  %v820_v37 = vpop.f32.mrb[39].mxu1  ;;  %1511 = vmatmul.mubr.msk.bf16.gmra.mrb[32].mxu0 %vm654_vm1, %v905_v27  ;;  %v886_v39 = vmax.f32 %v826_v32, 0.0 }
 0x1f7   : > { %v821_v38 = vadd.f32 %v820_v37, %v1877_v8  ;;  %v884_v41 = vmax.f32 %v818_v34, 0.0 }
 0x1f8   : > { %v887_v40 = vmax.f32 %v829_v36, 0.0 }
 0x1f9   : > { %v885_v42 = vmax.f32 %v821_v38, 0.0 }
 0x1fa   : > { %v907_v43 = vpack.c.bf16 %v887_v40, %v886_v39 }
 0x1fb   : > { %v906_v44 = vpack.c.bf16 %v885_v42, %v884_v41  ;;  %v1480_v45 = vpop.f32.mrb[40].mxu1 }
 0x1fc   : > { %v842_v46 = vadd.f32 %v1480_v45, %v1877_v8  ;;  %v833_v47 = vpop.f32.mrb[41].mxu1 }
 0x1fd   : > { %v834_v48 = vadd.f32 %v833_v47, %v1877_v8  ;;  %v1481_v49 = vpop.f32.mrb[42].mxu1  ;;  %1514 = vmatprep.mubr.msk.bf16.mxu0 %vm654_vm1, %v906_v44 }
 0x1fe   : > { %v845_v50 = vadd.f32 %v1481_v49, %v1877_v8  ;;  %v836_v51 = vpop.f32.mrb[43].mxu1  ;;  %1515 = vmatmul.mubr.msk.bf16.gmra.mrb[36].mxu0 %vm654_vm1, %v907_v43  ;;  %v890_v53 = vmax.f32 %v842_v46, 0.0 }
 0x1ff   : > { %v837_v52 = vadd.f32 %v836_v51, %v1877_v8  ;;  %v888_v55 = vmax.f32 %v834_v48, 0.0 }
 0x200   : > { %v891_v54 = vmax.f32 %v845_v50, 0.0 }
 0x201   : > { %v889_v56 = vmax.f32 %v837_v52, 0.0 }
 0x202   : > { %v909_v57 = vpack.c.bf16 %v891_v54, %v890_v53 }
 0x203   : > { %v908_v58 = vpack.c.bf16 %v889_v56, %v888_v55  ;;  %v1484_v59 = vpop.f32.mrb[44].mxu1 }
 0x204   : > { %v858_v60 = vadd.f32 %v1484_v59, %v1877_v8  ;;  %v849_v61 = vpop.f32.mrb[45].mxu1 }
 0x205   : > { %v850_v62 = vadd.f32 %v849_v61, %v1877_v8  ;;  %v1485_v63 = vpop.f32.mrb[46].mxu1  ;;  %1518 = vmatprep.mubr.msk.bf16.mxu0 %vm654_vm1, %v908_v58 }
 0x206   : > { %v861_v0 = vadd.f32 %v1485_v63, %v1877_v8  ;;  %v852_v1 = vpop.f32.mrb[47].mxu1  ;;  %1519 = vmatmul.mubr.msk.bf16.gmra.mrb[40].mxu0 %vm654_vm1, %v909_v57  ;;  %v894_v3 = vmax.f32 %v858_v60, 0.0 }
 0x207   : > { %v853_v2 = vadd.f32 %v852_v1, %v1877_v8  ;;  %v892_v6 = vmax.f32 %v850_v62, 0.0 }
 0x208   : > { %v895_v4 = vmax.f32 %v861_v0, 0.0 }
 0x209   : > { %v893_v7 = vmax.f32 %v853_v2, 0.0 }
 0x20a   : > { %v911_v9 = vpack.c.bf16 %v895_v4, %v894_v3 }
 0x20b   : > { %v910_v10 = vpack.c.bf16 %v893_v7, %v892_v6 }
 0x20d   : > { %1522 = vmatprep.mubr.msk.bf16.mxu0 %vm654_vm1, %v910_v10 }
 0x20e   : > { %1523 = vmatmul.mubr.msk.bf16.gmra.mrb[44].mxu0 %vm654_vm1, %v911_v9 }
 0x2a9   : > { %v1496_v13 = vpop.f32.mrb[16].mxu0 }
 0x2aa   : > { %v1039_v8 = vadd.f32 %v1496_v13, %v1932_v12  ;;  %v1030_v14 = vpop.f32.mrb[17].mxu0 }
 0x2ab   : > { %v1031_v15 = vadd.f32 %v1030_v14, %v1932_v12  ;;  %v1497_v16 = vpop.f32.mrb[18].mxu0 }
 0x2ac   : > { %1159 = vst [vmem:[%s1936_s23 + $0x10] sm:$0xff] %v1039_v8  ;;  %v1042_v26 = vadd.f32 %v1497_v16, %v1932_v12  ;;  %v1033_v28 = vpop.f32.mrb[19].mxu0 }
 0x2ad   : > { %1157 = vst [vmem:[%s1936_s23] sm:$0xff] %v1031_v15  ;;  %v1034_v17 = vadd.f32 %v1033_v28, %v1932_v12 }
 0x2ae   : > { %1160 = vst [vmem:[%s1936_s23 + $0x18] sm:$0xff] %v1042_v26 }
 0x2af   : > { %1158 = vst [vmem:[%s1936_s23 + $0x8] sm:$0xff] %v1034_v17 }
 0x2b1   : > { %v1500_v18 = vpop.f32.mrb[20].mxu0 }
 0x2b2   : > { %v1055_v29 = vadd.f32 %v1500_v18, %v1932_v12  ;;  %v1046_v5 = vpop.f32.mrb[21].mxu0 }
 0x2b3   : > { %v1047_v19 = vadd.f32 %v1046_v5, %v1932_v12  ;;  %v1501_v20 = vpop.f32.mrb[22].mxu0 }
 0x2b4   : > { %1163 = vst [vmem:[%s1936_s23 + $0x30] sm:$0xff] %v1055_v29  ;;  %v1058_v21 = vadd.f32 %v1501_v20, %v1932_v12  ;;  %v1049_v22 = vpop.f32.mrb[23].mxu0 }
 0x2b5   : > { %1161 = vst [vmem:[%s1936_s23 + $0x20] sm:$0xff] %v1047_v19  ;;  %v1050_v23 = vadd.f32 %v1049_v22, %v1932_v12 }
 0x2b6   : > { %1164 = vst [vmem:[%s1936_s23 + $0x38] sm:$0xff] %v1058_v21 }
 0x2b7   : > { %1162 = vst [vmem:[%s1936_s23 + $0x28] sm:$0xff] %v1050_v23 }
 0x2b9   : > { %v1504_v24 = vpop.f32.mrb[24].mxu0 }
 0x2ba   : > { %v1071_v25 = vadd.f32 %v1504_v24, %v1932_v12  ;;  %v1062_v27 = vpop.f32.mrb[25].mxu0 }
 0x2bb   : > { %v1063_v30 = vadd.f32 %v1062_v27, %v1932_v12  ;;  %v1505_v31 = vpop.f32.mrb[26].mxu0 }
 0x2bc   : > { %1167 = vst [vmem:[%s1936_s23 + $0x50] sm:$0xff] %v1071_v25  ;;  %v1074_v32 = vadd.f32 %v1505_v31, %v1932_v12  ;;  %v1065_v33 = vpop.f32.mrb[27].mxu0 }
 0x2bd   : > { %1165 = vst [vmem:[%s1936_s23 + $0x40] sm:$0xff] %v1063_v30  ;;  %v1066_v34 = vadd.f32 %v1065_v33, %v1932_v12 }
 0x2be   : > { %1168 = vst [vmem:[%s1936_s23 + $0x58] sm:$0xff] %v1074_v32 }
 0x2bf   : > { %1166 = vst [vmem:[%s1936_s23 + $0x48] sm:$0xff] %v1066_v34 }
 0x2c1   : > { %v1508_v35 = vpop.f32.mrb[28].mxu0 }
 0x2c2   : > { %v1087_v36 = vadd.f32 %v1508_v35, %v1932_v12  ;;  %v1078_v37 = vpop.f32.mrb[29].mxu0 }
 0x2c3   : > { %v1079_v38 = vadd.f32 %v1078_v37, %v1932_v12  ;;  %v1509_v39 = vpop.f32.mrb[30].mxu0 }
 0x2c4   : > { %1171 = vst [vmem:[%s1936_s23 + $0x70] sm:$0xff] %v1087_v36  ;;  %v1090_v40 = vadd.f32 %v1509_v39, %v1932_v12  ;;  %v1081_v41 = vpop.f32.mrb[31].mxu0 }
 0x2c5   : > { %1169 = vst [vmem:[%s1936_s23 + $0x60] sm:$0xff] %v1079_v38  ;;  %v1082_v42 = vadd.f32 %v1081_v41, %v1932_v12 }
 0x2c6   : > { %1172 = vst [vmem:[%s1936_s23 + $0x78] sm:$0xff] %v1090_v40 }
 0x2c7   : > { %1170 = vst [vmem:[%s1936_s23 + $0x68] sm:$0xff] %v1082_v42 }
 0x2c9   : > { %v1512_v43 = vpop.f32.mrb[32].mxu0 }
 0x2ca   : > { %v1103_v44 = vadd.f32 %v1512_v43, %v1932_v12  ;;  %v1094_v45 = vpop.f32.mrb[33].mxu0 }
 0x2cb   : > { %v1095_v46 = vadd.f32 %v1094_v45, %v1932_v12  ;;  %v1513_v47 = vpop.f32.mrb[34].mxu0 }
 0x2cc   : > { %1175 = vst [vmem:[%s1936_s23 + $0x90] sm:$0xff] %v1103_v44  ;;  %v1106_v48 = vadd.f32 %v1513_v47, %v1932_v12  ;;  %v1097_v49 = vpop.f32.mrb[35].mxu0 }
 0x2cd   : > { %1173 = vst [vmem:[%s1936_s23 + $0x80] sm:$0xff] %v1095_v46  ;;  %v1098_v50 = vadd.f32 %v1097_v49, %v1932_v12 }
 0x2ce   : > { %1176 = vst [vmem:[%s1936_s23 + $0x98] sm:$0xff] %v1106_v48 }
 0x2cf   : > { %1174 = vst [vmem:[%s1936_s23 + $0x88] sm:$0xff] %v1098_v50 }
 0x2d1   : > { %v1516_v51 = vpop.f32.mrb[36].mxu0 }
 0x2d2   : > { %v1119_v52 = vadd.f32 %v1516_v51, %v1932_v12  ;;  %v1110_v53 = vpop.f32.mrb[37].mxu0 }
 0x2d3   : > { %v1111_v54 = vadd.f32 %v1110_v53, %v1932_v12  ;;  %v1517_v55 = vpop.f32.mrb[38].mxu0 }
 0x2d4   : > { %1179 = vst [vmem:[%s1936_s23 + $0xb0] sm:$0xff] %v1119_v52  ;;  %v1122_v56 = vadd.f32 %v1517_v55, %v1932_v12  ;;  %v1113_v57 = vpop.f32.mrb[39].mxu0 }
 0x2d5   : > { %1177 = vst [vmem:[%s1936_s23 + $0xa0] sm:$0xff] %v1111_v54  ;;  %v1114_v58 = vadd.f32 %v1113_v57, %v1932_v12 }
 0x2d6   : > { %1180 = vst [vmem:[%s1936_s23 + $0xb8] sm:$0xff] %v1122_v56 }
 0x2d7   : > { %1178 = vst [vmem:[%s1936_s23 + $0xa8] sm:$0xff] %v1114_v58 }
 0x2d9   : > { %v1520_v59 = vpop.f32.mrb[40].mxu0 }
 0x2da   : > { %v1135_v60 = vadd.f32 %v1520_v59, %v1932_v12  ;;  %v1126_v61 = vpop.f32.mrb[41].mxu0 }
 0x2db   : > { %v1127_v62 = vadd.f32 %v1126_v61, %v1932_v12  ;;  %v1521_v63 = vpop.f32.mrb[42].mxu0 }
 0x2dc   : > { %1183 = vst [vmem:[%s1936_s23 + $0xd0] sm:$0xff] %v1135_v60  ;;  %v1138_v0 = vadd.f32 %v1521_v63, %v1932_v12  ;;  %v1129_v1 = vpop.f32.mrb[43].mxu0 }
 0x2dd   : > { %1181 = vst [vmem:[%s1936_s23 + $0xc0] sm:$0xff] %v1127_v62  ;;  %v1130_v2 = vadd.f32 %v1129_v1, %v1932_v12 }
 0x2de   : > { %1184 = vst [vmem:[%s1936_s23 + $0xd8] sm:$0xff] %v1138_v0 }
 0x2df   : > { %1182 = vst [vmem:[%s1936_s23 + $0xc8] sm:$0xff] %v1130_v2 }
 0x2e1   : > { %v1524_v3 = vpop.f32.mrb[44].mxu0 }
 0x2e2   : > { %v1151_v4 = vadd.f32 %v1524_v3, %v1932_v12  ;;  %v1142_v6 = vpop.f32.mrb[45].mxu0 }
 0x2e3   : > { %v1143_v7 = vadd.f32 %v1142_v6, %v1932_v12  ;;  %v1525_v9 = vpop.f32.mrb[46].mxu0 }
 0x2e4   : > { %1187 = vst [vmem:[%s1936_s23 + $0xf0] sm:$0xff] %v1151_v4  ;;  %v1154_v10 = vadd.f32 %v1525_v9, %v1932_v12  ;;  %v1145_v11 = vpop.f32.mrb[47].mxu0 }
 0x2e5   : > { %1185 = vst [vmem:[%s1936_s23 + $0xe0] sm:$0xff] %v1143_v7  ;;  %v1146_v13 = vadd.f32 %v1145_v11, %v1932_v12 }
 0x2e6   : > { %1188 = vst [vmem:[%s1936_s23 + $0xf8] sm:$0xff] %v1154_v10 }
 0x2e7   : > { %1186 = vst [vmem:[%s1936_s23 + $0xe8] sm:$0xff] %v1146_v13 }
 0x2e8   : > { %1610 = shalt.err (!%p1607_p3)
}
 0x2e9   : > { %s1611_s12 = scalar_lea.hbm %s2001_s7, 4096  ;;  %s1615_s15 = scalar_lea.hbm %s2057_s5, 8192 }
 0x2ea   : > { %p1612_p4 = scmp.ne.s32.totalorder %s2001_s7, %s1611_s12  ;;  %p1616_p9 = scmp.lt.u32.totalorder %s2001_s7, %s2057_s5 }
 0x2eb   : > { %p1617_p10 = scmp.lt.u32.totalorder %s1615_s15, %s1611_s12  ;;  %p1619_p12 = scmp.lt.u32.totalorder %s1611_s12, %s2001_s7 }
 0x2ec   : > { %p1613_p7 = pnand %p1612_p4, %p1732_p5 }
 0x2ed   : > { %p1618_p11 = por %p1617_p10, %p1616_p9 }
 0x2ee   : > { %p1614_p8 = pneg %p1613_p7 }
 0x2ef   : > { %p1620_p13 = por %p1619_p12, %p1618_p11 }
 0x2f1   : > { %p1621_p0 = pnand %p1620_p13, %p1614_p8 }
 0x2f3   : > { %1624 = shalt.err (!%p1621_p0)
}
 0x2f4   : > { %s1662_s23 = smov 128   ;;  %s1663_s25 = smov 8  }
 0x2f5   : > { %1530 = dma.vmem_to_hbm [thread:$0]  (%p1732_p5), %s2003_s26, 4096, %s2001_s7, %s2011_s22, %s1662_s23, %s1662_s23, %s1663_s25  }
 0x2f6 PF: > { %p1536_p1 = scmp.ge.s32.totalorder %s1659_s21, 2  ;;  %s1218_s30 = sand.u32 1, %s1647_s18  }
 0x2f7   : > { %s1219_s6 = scalar_lea.sflag [#allocation3], %s1218_s30 }
 0x2f8   : > { %p1533_p2 = pnand %p1536_p1, %p1736_p6 }
 0x2fa   : > { %1642 = dma.done.wait (!%p1533_p2), %s1219_s6, 4096  }
 0x2fb   : > { %1644 = vsyncadd (!%p1533_p2), %s1219_s6, 4294963200  ;;  %p15_p3 = scmp.ge.s32.totalorder %s1719_s24, 4   ;;  %s2060_s18 = smov %s1651_s19 }
 0x2fc   : > { %s2061_s19 = smov %s1655_s20  ;;  %s2062_s20 = smov %s1730_s27 }
 0x2fd   : > { %s2063_s21 = smov %s1719_s24  ;;  %17 = sbr.rel (!%p15_p3) target bundleno = 3 (0x3), region = 75 }
 0x304   :  { %1224 = vsyncpa [#allocation3], 1 }
 0x305   :  { %1226 = vsyncpa [#allocation3 + $0x1], 1 }

</bundles_post_ra>
